<compile_context>
chip_gen: v7x
topology: tpu7x:2x2x1
jax: 0.10.0
libtpu: 0.0.40
codegen_flags: <defaults>
</compile_context>

<pallas_src>
import functools

import jax
import jax.numpy as jnp
from jax import lax
from jax.experimental import pallas as pl
from jax.experimental.pallas import tpu as pltpu

TEMPERATURE = 2.0
ALPHA = 0.3


def _distill_loss_kernel(student_ref, teacher_ref, labels_ref, out_ref, *,
                         b_total, block_b):
    i = pl.program_id(0)
    s = student_ref[...].astype(jnp.float32)          # (TB, C) student logits
    t = teacher_ref[...].astype(jnp.float32)          # (TB, C) teacher logits
    lbl = labels_ref[...]                             # (TB, 1) int32 class labels
    tb, c = s.shape

    inv_temp = jnp.float32(1.0 / TEMPERATURE)

    # Rows past the true batch (ragged last block) may contain garbage/non-finite data:
    # use a select (jnp.where), not a multiply, so NaN/Inf never reaches the block sums.
    row_ids = i * block_b + lax.broadcasted_iota(jnp.int32, (tb, 1), 0)
    valid = row_ids < b_total                          # (TB, 1) bool

    # ----- teacher soft targets at temperature T (analytically folded, one exp) -----
    zt = t * inv_temp
    zt = zt - jnp.max(zt, axis=-1, keepdims=True)
    e_t = jnp.exp(zt)                                  # exp #1
    den_t = jnp.sum(e_t, axis=-1, keepdims=True)
    log_den_t = jnp.log(den_t)

    # ----- student: one exp at temperature T; exp(z1) = e_s**T since T == 2 -----
    z1 = s - jnp.max(s, axis=-1, keepdims=True)
    zs = z1 * inv_temp
    e_s = jnp.exp(zs)                                  # exp #2
    den_s = jnp.sum(e_s, axis=-1, keepdims=True)
    log_den_s = jnp.log(den_s)
    if TEMPERATURE == 2.0:
        e1 = e_s * e_s                                 # exp(z1) with zero extra EUP work
    else:
        e1 = jnp.exp(z1)                               # generic fallback
    log_den1 = jnp.log(jnp.sum(e1, axis=-1, keepdims=True))

    # ----- KL(teacher_T || student_T) per row, algebraically folded:
    #   sum_c pt*(log_pt - log_ps) = (1/den_t)*sum_c e_t*(zt - zs) + (log_den_s - log_den_t)
    # (uses sum_c pt == 1; pt, log_pt, log_ps are never materialized.)
    inner = jnp.sum(e_t * (zt - zs), axis=-1, keepdims=True)            # (TB, 1)
    soft_rows = inner * pl.reciprocal(den_t, approx=False) + (log_den_s - log_den_t)
    soft_sum = jnp.sum(jnp.where(valid, soft_rows, 0.0))

    # ----- CE at T=1: -log_softmax(student)[label] = log_den1 - z1[label] -----
    class_ids = lax.broadcasted_iota(jnp.int32, (tb, c), 1)
    picked = jnp.sum(jnp.where(class_ids == lbl, z1, 0.0), axis=-1, keepdims=True)
    nll_rows = log_den1 - picked                                         # (TB, 1)
    nll_sum = jnp.sum(jnp.where(valid, nll_rows, 0.0))

    # Fold the static alpha / T^2 weights into the per-block partial; wrapper applies 1/B.
    contrib = (jnp.float32(ALPHA * TEMPERATURE * TEMPERATURE) * soft_sum
               + jnp.float32(1.0 - ALPHA) * nll_sum)
    out_ref[...] = jnp.broadcast_to(contrib, out_ref.shape).astype(jnp.float32)


def distillation_loss(student_logits, teacher_logits, labels, *, block_b=None):
    B, C = student_logits.shape
    itemsize = jnp.dtype(student_logits.dtype).itemsize

    # dtype-native sublane multiple: f32 packs 1 row/sublane, bf16 packs 2, int8/fp8 pack 4.
    sub = {4: 8, 2: 16, 1: 32}.get(itemsize, 8)

    if block_b is None:
        # Size the block off the f32 working set (~3 MiB per full (TB, C) temporary) so
        # 2 inputs x 2 pipeline buffers + the in-kernel f32 temporaries stay well under
        # ~48 MiB scoped VMEM (v7x has only 64 MiB physical; v5e/v6e have 128 MiB).
        f32_target = 3 << 20
        block_b = max(sub, min(4096, f32_target // max(1, C * 4)))
    block_b = max(sub, (block_b // sub) * sub)
    block_b = min(block_b, ((B + sub - 1) // sub) * sub)   # don't tile past the batch

    num_blocks = pl.cdiv(B, block_b)
    # No wrapper-side jnp.pad: padding would cost an extra full HBM read+write of both
    # logits tensors.  The ragged last block is masked inside the kernel instead.
    labels2d = labels.reshape(B, 1).astype(jnp.int32)

    kernel = functools.partial(_distill_loss_kernel, b_total=B, block_b=block_b)

    # Explicit VMEM budget: 2 inputs x 2 pipeline buffers + ~10 f32 full-block
    # temporaries + slack, clamped to [32 MiB, 48 MiB] (safe on every generation).
    in_block_bytes = block_b * C * itemsize
    f32_block_bytes = block_b * C * 4
    vmem_budget = 4 * in_block_bytes + 10 * f32_block_bytes + (2 << 20)
    vmem_limit_bytes = int(min(max(vmem_budget, 32 << 20), 48 << 20))

    cost = pl.CostEstimate(
        flops=int(14 * B * C),
        transcendentals=int(2 * B * C),
        bytes_accessed=int(2 * B * C * itemsize + B * 4 + num_blocks * 8 * 128 * 4),
    )

    # TODO(synk): for vocab-scale C (C*4 bytes >~ 1 MiB) add a class-tiled online-softmax
    # path (2-D grid: batch "parallel", class "arbitrary" with running max / logsumexp /
    # running sum(e_t*(zt-zs))) so the working set also fits v7x's 64 MiB VMEM.

    partials = pl.pallas_call(
        kernel,
        out_shape=jax.ShapeDtypeStruct((num_blocks, 8, 128), jnp.float32),
        grid=(num_blocks,),
        in_specs=[
            pl.BlockSpec((block_b, C), lambda i: (i, 0)),
            pl.BlockSpec((block_b, C), lambda i: (i, 0)),
            pl.BlockSpec((block_b, 1), lambda i: (i, 0)),
        ],
        out_specs=pl.BlockSpec((1, 8, 128), lambda i: (i, 0, 0)),
        compiler_params=pltpu.CompilerParams(
            dimension_semantics=("parallel",),
            vmem_limit_bytes=vmem_limit_bytes,
        ),
        cost_estimate=cost,
    )(student_logits, teacher_logits, labels2d)

    # Tiny final reduction over per-block partials; mean over the true batch + blend
    # weights were already folded into each partial.
    return jnp.sum(partials[:, 0, 0]) / jnp.float32(B)


def _reference_loss(student_logits, teacher_logits, labels):
    # Pure-JAX reference matching the PyTorch forward.
    temp = TEMPERATURE
    B = student_logits.shape[0]
    soft_targets = jax.nn.softmax(teacher_logits / temp, axis=-1)
    soft_prob = jax.nn.log_softmax(student_logits / temp, axis=-1)
    soft_targets_loss = jnp.sum(soft_targets * (jnp.log(soft_targets) - soft_prob)) / B * temp ** 2
    log_p = jax.nn.log_softmax(student_logits, axis=-1)
    label_loss = -jnp.mean(jnp.take_along_axis(log_p, labels[:, None], axis=-1))
    return ALPHA * soft_targets_loss + (1.0 - ALPHA) * label_loss


if __name__ == "__main__":
    key = jax.random.PRNGKey(0)
    # (8, 128): divisible batch; (10, 128): ragged last block exercising the in-kernel mask.
    for B, C in [(8, 128), (10, 128)]:
        key, k_s, k_t, k_l = jax.random.split(key, 4)
        student = jax.random.normal(k_s, (B, C), dtype=jnp.float32)
        teacher = jax.random.normal(k_t, (B, C), dtype=jnp.float32)
        labels = jax.random.randint(k_l, (B,), 0, C, dtype=jnp.int32)

        loss = distillation_loss(student, teacher, labels)
        jax.block_until_ready(loss)

        ref = _reference_loss(student, teacher, labels)
        assert jnp.allclose(loss, ref, rtol=1e-5, atol=1e-5), (B, C, loss, ref)

    print("KERNEL_OK")
</pallas_src>

<mosaic_0001>
module attributes {stable_mosaic.version = 11 : i64} {
  func.func @_distill_loss_kernel(%arg0: i32, %arg1: memref<8x128xf32, #tpu.memory_space<vmem>>, %arg2: memref<8x128xf32, #tpu.memory_space<vmem>>, %arg3: memref<8x1xi32, #tpu.memory_space<vmem>>, %arg4: memref<1x8x128xf32, #tpu.memory_space<vmem>>) attributes {dimension_semantics = [#tpu.dimension_semantics<parallel>], iteration_bounds = array<i64: 1>, scalar_prefetch = 0 : i64, scratch_operands = 0 : i64, tpu.core_type = #tpu.core_type<tc>, window_params = [{transform_indices = @transform_0, window_bounds = array<i64: 8, 128>}, {transform_indices = @transform_1, window_bounds = array<i64: 8, 128>}, {transform_indices = @transform_2, window_bounds = array<i64: 8, 1>}, {transform_indices = @transform_3, window_bounds = array<i64: 1, 8, 128>}]} {
    %c0 = arith.constant 0 : index
    %c0_0 = arith.constant 0 : index
    %0 = vector.load %arg1[%c0, %c0_0] : memref<8x128xf32, #tpu.memory_space<vmem>>, vector<8x128xf32>
    %c0_1 = arith.constant 0 : index
    %c0_2 = arith.constant 0 : index
    %1 = vector.load %arg2[%c0_1, %c0_2] : memref<8x128xf32, #tpu.memory_space<vmem>>, vector<8x128xf32>
    %c0_3 = arith.constant 0 : index
    %c0_4 = arith.constant 0 : index
    %2 = vector.load %arg3[%c0_3, %c0_4] : memref<8x1xi32, #tpu.memory_space<vmem>>, vector<8x1xi32>
    %c8_i32 = arith.constant 8 : i32
    %3 = arith.muli %arg0, %c8_i32 : i32
    %4 = tpu.iota {dimensions = array<i32: 0>} : vector<8x1xi32>
    %5 = vector.broadcast %3 : i32 to vector<8x1xi32>
    %6 = arith.addi %5, %4 : vector<8x1xi32>
    %c8_i32_5 = arith.constant 8 : i32
    %7 = vector.broadcast %c8_i32_5 : i32 to vector<8x1xi32>
    %8 = arith.cmpi slt, %6, %7 : vector<8x1xi32>
    %cst = arith.constant 5.000000e-01 : f32
    %9 = vector.broadcast %cst : f32 to vector<8x128xf32>
    %10 = arith.mulf %1, %9 : vector<8x128xf32>
    %cst_6 = arith.constant dense<0xFF800000> : vector<8xf32>
    %11 = vector.multi_reduction <maximumf>, %10, %cst_6 [1] : vector<8x128xf32> to vector<8xf32>
    %12 = vector.shape_cast %11 : vector<8xf32> to vector<8x1xf32>
    %13 = vector.broadcast %12 : vector<8x1xf32> to vector<8x128xf32>
    %14 = arith.subf %10, %13 : vector<8x128xf32>
    %15 = math.exp %14 : vector<8x128xf32>
    %cst_7 = arith.constant dense<0.000000e+00> : vector<8xf32>
    %16 = vector.multi_reduction <add>, %15, %cst_7 [1] : vector<8x128xf32> to vector<8xf32>
    %17 = vector.shape_cast %16 : vector<8xf32> to vector<8x1xf32>
    %18 = math.log %17 : vector<8x1xf32>
    %cst_8 = arith.constant dense<0xFF800000> : vector<8xf32>
    %19 = vector.multi_reduction <maximumf>, %0, %cst_8 [1] : vector<8x128xf32> to vector<8xf32>
    %20 = vector.shape_cast %19 : vector<8xf32> to vector<8x1xf32>
    %21 = vector.broadcast %20 : vector<8x1xf32> to vector<8x128xf32>
    %22 = arith.subf %0, %21 : vector<8x128xf32>
    %cst_9 = arith.constant 5.000000e-01 : f32
    %23 = vector.broadcast %cst_9 : f32 to vector<8x128xf32>
    %24 = arith.mulf %22, %23 : vector<8x128xf32>
    %25 = math.exp %24 : vector<8x128xf32>
    %cst_10 = arith.constant dense<0.000000e+00> : vector<8xf32>
    %26 = vector.multi_reduction <add>, %25, %cst_10 [1] : vector<8x128xf32> to vector<8xf32>
    %27 = vector.shape_cast %26 : vector<8xf32> to vector<8x1xf32>
    %28 = math.log %27 : vector<8x1xf32>
    %29 = arith.mulf %25, %25 : vector<8x128xf32>
    %cst_11 = arith.constant dense<0.000000e+00> : vector<8xf32>
    %30 = vector.multi_reduction <add>, %29, %cst_11 [1] : vector<8x128xf32> to vector<8xf32>
    %31 = vector.shape_cast %30 : vector<8xf32> to vector<8x1xf32>
    %32 = math.log %31 : vector<8x1xf32>
    %33 = arith.subf %14, %24 : vector<8x128xf32>
    %34 = arith.mulf %15, %33 : vector<8x128xf32>
    %cst_12 = arith.constant dense<0.000000e+00> : vector<8xf32>
    %35 = vector.multi_reduction <add>, %34, %cst_12 [1] : vector<8x128xf32> to vector<8xf32>
    %36 = vector.shape_cast %35 : vector<8xf32> to vector<8x1xf32>
    %37 = tpu.reciprocal %17 : vector<8x1xf32> -> vector<8x1xf32>
    %38 = arith.mulf %36, %37 : vector<8x1xf32>
    %39 = arith.subf %28, %18 : vector<8x1xf32>
    %40 = arith.addf %38, %39 : vector<8x1xf32>
    %cst_13 = arith.constant 0.000000e+00 : f32
    %41 = vector.broadcast %cst_13 : f32 to vector<8x1xf32>
    %42 = arith.select %8, %40, %41 : vector<8x1xi1>, vector<8x1xf32>
    %43 = vector.shape_cast %42 : vector<8x1xf32> to vector<1x8x1xf32>
    %cst_14 = arith.constant dense<0.000000e+00> : vector<1xf32>
    %44 = vector.multi_reduction <add>, %43, %cst_14 [1, 2] : vector<1x8x1xf32> to vector<1xf32>
    %45 = vector.shape_cast %44 : vector<1xf32> to vector<1x1x1xf32>
    %46 = vector.extract %45[0, 0, 0] : f32 from vector<1x1x1xf32>
    %47 = tpu.iota {dimensions = array<i32: 1>} : vector<8x128xi32>
    %48 = vector.broadcast %2 : vector<8x1xi32> to vector<8x128xi32>
    %49 = arith.cmpi eq, %47, %48 : vector<8x128xi32>
    %cst_15 = arith.constant 0.000000e+00 : f32
    %50 = vector.broadcast %cst_15 : f32 to vector<8x128xf32>
    %51 = arith.select %49, %22, %50 : vector<8x128xi1>, vector<8x128xf32>
    %cst_16 = arith.constant dense<0.000000e+00> : vector<8xf32>
    %52 = vector.multi_reduction <add>, %51, %cst_16 [1] : vector<8x128xf32> to vector<8xf32>
    %53 = vector.shape_cast %52 : vector<8xf32> to vector<8x1xf32>
    %54 = arith.subf %32, %53 : vector<8x1xf32>
    %cst_17 = arith.constant 0.000000e+00 : f32
    %55 = vector.broadcast %cst_17 : f32 to vector<8x1xf32>
    %56 = arith.select %8, %54, %55 : vector<8x1xi1>, vector<8x1xf32>
    %57 = vector.shape_cast %56 : vector<8x1xf32> to vector<1x8x1xf32>
    %cst_18 = arith.constant dense<0.000000e+00> : vector<1xf32>
    %58 = vector.multi_reduction <add>, %57, %cst_18 [1, 2] : vector<1x8x1xf32> to vector<1xf32>
    %59 = vector.shape_cast %58 : vector<1xf32> to vector<1x1x1xf32>
    %60 = vector.extract %59[0, 0, 0] : f32 from vector<1x1x1xf32>
    %cst_19 = arith.constant 1.200000e+00 : f32
    %61 = arith.mulf %cst_19, %46 : f32
    %cst_20 = arith.constant 0.699999988 : f32
    %62 = arith.mulf %cst_20, %60 : f32
    %63 = arith.addf %61, %62 : f32
    %64 = vector.broadcast %63 : f32 to vector<1x8x128xf32>
    %c0_21 = arith.constant 0 : index
    %c0_22 = arith.constant 0 : index
    %c0_23 = arith.constant 0 : index
    %65 = vector.load %arg4[%c0_21, %c0_22, %c0_23] : memref<1x8x128xf32, #tpu.memory_space<vmem>>, vector<1x8x128xf32>
    tpu.vector_store %arg4[%c0_21, %c0_22, %c0_23], %64 {strides = array<i32>} : memref<1x8x128xf32, #tpu.memory_space<vmem>>, vector<1x8x128xf32>,
    return
  }
  func.func @transform_0(%arg0: i32) -> (i32, i32) {
    %c0_i32 = arith.constant 0 : i32
    %c0_i32_0 = arith.constant 0 : i32
    return %arg0, %c0_i32 : i32, i32
  }
  func.func @transform_1(%arg0: i32) -> (i32, i32) {
    %c0_i32 = arith.constant 0 : i32
    %c0_i32_0 = arith.constant 0 : i32
    return %arg0, %c0_i32 : i32, i32
  }
  func.func @transform_2(%arg0: i32) -> (i32, i32) {
    %c0_i32 = arith.constant 0 : i32
    %c0_i32_0 = arith.constant 0 : i32
    return %arg0, %c0_i32 : i32, i32
  }
  func.func @transform_3(%arg0: i32) -> (i32, i32, i32) {
    %c0_i32 = arith.constant 0 : i32
    %c0_i32_0 = arith.constant 0 : i32
    %c0_i32_1 = arith.constant 0 : i32
    return %arg0, %c0_i32, %c0_i32_0 : i32, i32, i32
  }
}

</mosaic_0001>

<bundles_post_ra>
// kernel: tpu_custom_call.1
= control target key start
LH: loop header
LB: loop body
LE: loop exit
PB: predicated region body
PF: predicated region fallthrough
CT: control target
= control target key end

     0   :  { %8 = vsyncpa [#allocation3], 0  ;;  %s244_s0 = inlined_call_operand.vmem [shape: f32[8,128], index: 0, kind: input, shape index: {}]   ;;  %s245_s1 = inlined_call_operand.hbm [shape: f32[8,128], index: 1, kind: input, shape index: {}]   ;;  %s246_s2 = inlined_call_operand.vmem [shape: s32[8,1], index: 2, kind: input, shape index: {}]   ;;  %s247_s3 = inlined_call_operand.hbm [shape: f32[1,8,128], index: 3, kind: output, shape index: {}]  }
   0x1   :  { %9 = vsyncpa [#allocation4], 0  ;;  %s191_s12 = smov [#allocation2]   ;;  %s143_s16 = scalar_lea.hbm %s245_s1, 128 }
   0x2   :  { %s18_s13 = sshll.u32 %s191_s12, 4  ;;  %p144_p0 = scmp.ne.s32.totalorder %s245_s1, %s143_s16  ;;  %s19_s13 = int_to_ptr.vmem [resolvable:$true] %s18_s13 }
   0x3   :  { %p147_p1 = scmp.lt.u32.totalorder %s143_s16, %s245_s1 }
   0x5   :  { %p149_p2 = pnand %p147_p1, %p144_p0 }
   0x7   :  { %152 = shalt.err (!%p149_p2)
}
   0x8   :  { %s153_s21 = scalar_lea.vmem %s19_s13, 128  ;;  %p158_p4 = scmp.lt.s32.totalorder %s19_s13, %s19_s13 }
   0x9   :  { %p154_p3 = scmp.ne.s32.totalorder %s19_s13, %s153_s21  ;;  %p159_p5 = scmp.lt.s32.totalorder %s153_s21, %s153_s21 }
   0xb   :  { %p160_p6 = por %p159_p5, %p158_p4 }
   0xd   :  { %p161_p7 = pnand %p160_p6, %p154_p3 }
   0xf   :  { %164 = shalt.err (!%p161_p7)
}
  0x10   :  { %21 = dma.hbm_to_vmem [thread:$0]  %s245_s1, 128, %s19_s13, [#allocation3]  }
  0x11   :  { %187 = dma.done.wait [#allocation3], 128  }
  0x12   :  { %188 = vsyncadd [#allocation3], 4294967168  ;;  %v192_v0 = vmov 0   ;;  %v27_v1 = vld [vmem:[%s244_s0] sm:$0xff]  ;;  %v81_v13 = vlaneseq  ;;  %vm70_vm1 = vcmask 7168   ;;  %s193_s29 = smov [#allocation5]  }
  0x13   :  { %129 = vset.pattern.permute.xlu1 %v192_v0  ;;  %130 = vset.pattern.permute.xlu0 %v192_v0  ;;  %v28_v2 = vld [vmem:[#allocation2] sm:$0xff]  ;;  %s113_s30 = sshll.u32 %s193_s29, 4  ;;  %s114_s30 = int_to_ptr.vmem [resolvable:$true] %s113_s30 }
  0x14   :  { %v29_v3 = vld [vmem:[%s246_s2] sm:$0xff]  ;;  %46 = vmax.xlane.f32.xlu0 %v27_v1  ;;  %v36_v4 = vmul.f32 0.5, %v28_v2  ;;  %v82_v16 = vand.u32 127, %v81_v13  ;;  %s165_s5 = scalar_lea.vmem %s114_s30, 128  ;;  %p170_p9 = scmp.lt.s32.totalorder %s114_s30, %s114_s30 }
  0x15   :  { %84 = vperm.xlu1 %129, %v29_v3   ;;  %p166_p8 = scmp.ne.s32.totalorder %s114_s30, %s165_s5  ;;  %p171_p10 = scmp.lt.s32.totalorder %s165_s5, %s165_s5 }
  0x17   :  { %p172_p11 = por %p171_p10, %p170_p9 }
  0x18   :  { %37 = vmax.xlane.f32.xlu0 %v36_v4 }
  0x19   :  { %p173_p12 = pnand %p172_p11, %p166_p8 }
  0x94   :  { %v85_v18 = vpop.permute.xlu1 %84 }
  0x95   :  { %vm86_vm0 = vcmp.eq.s32.totalorder %v82_v16, %v85_v18 }
  0xa1   :  { %v47_v5 = vpop.xlane.xlu0 %46 }
  0xa2   :  { %v48_v6 = vsub.f32 %v27_v1, %v47_v5 }
  0xa4   :  { %v49_v7 = vmul.f32 0.5, %v48_v6  ;;  %v87_v20 = vsel %vm86_vm0, %v48_v6, 0.0 }
  0xa5   :  { %v38_v8 = vpop.xlane.xlu0 %37 }
  0xa6   :  { %v50_v9 = vmul.f32 1.442695, %v49_v7  ;;  %v39_v10 = vsub.f32 %v36_v4, %v38_v8 }
  0xa8   :  { %131 = vpow2.f32 %v50_v9  ;;  %v40_v11 = vmul.f32 1.442695, %v39_v10  ;;  %v61_v17 = vsub.f32 %v39_v10, %v49_v7 }
  0xaa   :  { %133 = vpow2.f32 %v40_v11 }
  0xb2   :  { %v132_v12 = vpop.eup %131 }
  0xb3   :  { %52 = vadd.xlane.f32.xlu0 %v132_v12  ;;  %v56_v15 = vmul.f32 %v132_v12, %v132_v12 }
  0xb4   :  { %v134_v14 = vpop.eup %133 }
  0xb5   :  { %42 = vadd.xlane.f32.xlu1 %v134_v14  ;;  %v62_v19 = vmul.f32 %v134_v14, %v61_v17 }
  0xb7   :  { %57 = vadd.xlane.f32.xlu0 %v56_v15 }
  0xbb   :  { %63 = vadd.xlane.f32.xlu0 %v62_v19 }
  0xbf   :  { %88 = vadd.xlane.f32.xlu0 %v87_v20 }
 0x140   :  { %v53_v21 = vpop.xlane.xlu0 %52 }
 0x141   :  { %135 = vlog2.f32 %v53_v21 }
 0x142   :  { %v43_v22 = vpop.xlane.xlu1 %42 }
 0x143   :  { %137 = vlog2.f32 %v43_v22 }
 0x144   :  { %139 = vrcp.f32 %v43_v22  ;;  %v58_v23 = vpop.xlane.xlu0 %57 }
 0x145   :  { %141 = vlog2.f32 %v58_v23 }
 0x148   :  { %v64_v26 = vpop.xlane.xlu0 %63 }
 0x14b   :  { %v136_v24 = vpop.eup %135 }
 0x14c   :  { %v55_v28 = vmul.f32 0.6931472, %v136_v24  ;;  %v89_v35 = vpop.xlane.xlu0 %88 }
 0x14d   :  { %v138_v25 = vpop.eup %137 }
 0x14e   :  { %v140_v27 = vpop.eup %139  ;;  %v45_v29 = vmul.f32 0.6931472, %v138_v25 }
 0x14f   :  { %v142_v30 = vpop.eup %141  ;;  %v66_v31 = vmul.f32 %v140_v27, %v64_v26 }
 0x150   :  { %v60_v32 = vmul.f32 0.6931472, %v142_v30  ;;  %v67_v33 = vsub.f32 %v55_v28, %v45_v29 }
 0x152   :  { %v68_v34 = vadd.f32 %v67_v33, %v66_v31  ;;  %v90_v36 = vsub.f32 %v60_v32, %v89_v35 }
 0x154   :  { %v71_v37 = vsel %vm70_vm1, %v68_v34, 0.0  ;;  %v92_v38 = vsel %vm70_vm1, %v90_v36, 0.0 }
 0x155   :  { %72 = vadd.xlane.f32.xlu0 %v71_v37 }
 0x159   :  { %93 = vadd.xlane.f32.xlu0 %v92_v38 }
 0x1e2   :  { %v73_v39 = vpop.xlane.xlu0 %72 }
 0x1e3   :  { %v74_v40 = vrot.slane %v73_v39, 4 }
 0x1e5   :  { %v75_v41 = vadd.f32 %v74_v40, %v73_v39 }
 0x1e6   :  { %v94_v42 = vpop.xlane.xlu0 %93 }
 0x1e7   :  { %v76_v43 = vrot.slane %v75_v41, 2  ;;  %v95_v44 = vrot.slane %v94_v42, 4 }
 0x1e9   :  { %v96_v45 = vadd.f32 %v95_v44, %v94_v42  ;;  %v77_v46 = vadd.f32 %v76_v43, %v75_v41 }
 0x1eb   :  { %v97_v47 = vrot.slane %v96_v45, 2  ;;  %v78_v48 = vrot.slane %v77_v46, 1 }
 0x1ed   :  { %v98_v49 = vadd.f32 %v97_v47, %v96_v45  ;;  %v79_v50 = vadd.f32 %v78_v48, %v77_v46 }
 0x1ef   :  { %122 = vpush %v79_v50  ;;  %v99_v51 = vrot.slane %v98_v49, 1 }
 0x1f1   :  { %v100_v52 = vadd.f32 %v99_v51, %v98_v49 }
 0x1f3   :  { %124 = vpush %v100_v52 }
 0x220   :  { %s123_s0 = spop %122 }
 0x221   :  { %s102_s1 = smul.f32 1.2, %s123_s0 }
 0x224   :  { %s125_s2 = spop %124 }
 0x225   :  { %s103_s28 = smul.f32 0.7, %s125_s2 }
 0x227   :  { %s104_s4 = sadd.f32 %s103_s28, %s102_s1 }
 0x229   :  { %v105_v53 = vstv %s104_s4 }
 0x22a   :  { %106 = vst [vmem:[#allocation5] sm:$0xff] %v105_v53 }
 0x22b   :  { %176 = shalt.err (!%p173_p12)
}
 0x22c   :  { %s177_s8 = scalar_lea.hbm %s247_s3, 128 }
 0x22d   :  { %p178_p13 = scmp.ne.s32.totalorder %s247_s3, %s177_s8  ;;  %p181_p0 = scmp.lt.u32.totalorder %s177_s8, %s247_s3 }
 0x22f   :  { %p183_p1 = pnand %p181_p0, %p178_p13 }
 0x231   :  { %186 = shalt.err (!%p183_p1)
}
 0x232   :  { %116 = dma.vmem_to_hbm [thread:$0]  %s114_s30, 128, %s247_s3, [#allocation4]  }
 0x233   :  { %189 = dma.done.wait [#allocation4], 128  }
 0x234   :  { %190 = vsyncadd [#allocation4], 4294967168 }
 0x235   :  { %120 = vsyncpa [#allocation3], 1 }
 0x236   :  { %121 = vsyncpa [#allocation4], 1 }

</bundles_post_ra>
